<compile_context>
chip_gen: v6e
topology: v6e:2x2x1
jax: 0.10.0
libtpu: 0.0.40
codegen_flags: <defaults>
</compile_context>

<pallas_src>
import math
import jax
import jax.numpy as jnp
from jax.experimental import pallas as pl
from jax.experimental.pallas import tpu as pltpu

_A = math.sqrt(2.0 / math.pi)   # sqrt(2/pi)
_B = _A * 0.044715              # folded constant: A*(x + 0.044715 x^3) == x*(A + B*x^2)

_TARGET_BLOCK_BYTES = 4 * 1024 * 1024   # ~4 MiB per block (in+out double-buffered ~16 MiB)
_VMEM_LIMIT_BYTES = 48 * 1024 * 1024    # raise scoped VMEM so double-buffering is accepted
_MAX_BLOCK_BYTES = 8 * 1024 * 1024      # guard: single-buffer block footprint ceiling
_MIN_PALLAS_ELEMS = 256 * 1024          # below this, fused XLA beats pallas_call launch cost


def _gelu_tanh_kernel(x_ref, o_ref):
    # f32 compute (matches torch opmath for half dtypes); ~7 VALU ops/elem + EUP tanh.
    x = x_ref[...].astype(jnp.float32)
    x2 = x * x
    t = jnp.tanh(x * (_A + _B * x2))
    hx = 0.5 * x
    o_ref[...] = (hx + hx * t).astype(o_ref.dtype)


def _gelu_tanh_ref(x):
    """Plain-jnp fallback (fused by XLA) for tiny / degenerate inputs."""
    xf = x.astype(jnp.float32)
    t = jnp.tanh(xf * (_A + _B * xf * xf))
    return (0.5 * xf * (1.0 + t)).astype(x.dtype)


def gelu_tanh(x: jax.Array, *, min_pallas_elems: int = _MIN_PALLAS_ELEMS) -> jax.Array:
    """Elementwise tanh-approx GELU == torch.nn.functional.gelu(x, approximate='tanh')."""
    n = x.size
    if n == 0 or x.ndim == 0 or n < min_pallas_elems:
        return _gelu_tanh_ref(x)

    orig_shape = x.shape
    dtype = x.dtype
    itemsize = jnp.dtype(dtype).itemsize

    # Keep the original last (lane) dim; only collapse leading dims.  This preserves
    # the (8,128)-tiled HBM layout so no relayout copies are added around the kernel.
    if x.ndim == 1:
        x = x.reshape(1, n)
    D = x.shape[-1]
    rows = n // D
    x2d = x.reshape(rows, D)

    # Sublane granularity: 8 rows (4-byte), 16 (2-byte), 32 (1-byte) dtypes.
    sub = max(8, 32 // max(itemsize, 1))

    if D * sub * itemsize > _MAX_BLOCK_BYTES:
        # TODO(synk): add a second (lane) grid axis for extremely wide last dims.
        return _gelu_tanh_ref(x).reshape(orig_shape)

    # Rows per block: ~_TARGET_BLOCK_BYTES, a multiple of the sublane granularity.
    br = max(sub, (_TARGET_BLOCK_BYTES // (D * itemsize)) // sub * sub)
    if rows <= br:
        if rows >= 2 * sub:
            # Don't swallow everything into grid=(1,): >=2 steps lets multi-core chips
            # shard the row axis and gives the pipeline load/store overlap.
            half = (rows + 1) // 2
            br = ((half + sub - 1) // sub) * sub
        else:
            br = rows  # full row extent -> always layout-legal
    grid = (pl.cdiv(rows, br),)  # partial last block is masked automatically

    out2d = pl.pallas_call(
        _gelu_tanh_kernel,
        out_shape=jax.ShapeDtypeStruct((rows, D), dtype),
        grid_spec=pltpu.PrefetchScalarGridSpec(
            num_scalar_prefetch=0,
            grid=grid,
            in_specs=[pl.BlockSpec((br, D), lambda i: (i, 0))],
            out_specs=pl.BlockSpec((br, D), lambda i: (i, 0)),
        ),
        compiler_params=pltpu.CompilerParams(
            dimension_semantics=("parallel",),
            vmem_limit_bytes=_VMEM_LIMIT_BYTES,
        ),
        cost_estimate=pl.CostEstimate(
            flops=8 * n, transcendentals=n, bytes_accessed=2 * n * itemsize),
    )(x2d)

    return out2d.reshape(orig_shape)


if __name__ == "__main__":
    key = jax.random.PRNGKey(0)
    k1, k2, k3, k4 = jax.random.split(key, 4)

    # 1) Primary small shape consistent with the module's forward; force the Pallas path.
    x1 = jax.random.normal(k1, (2, 4, 16, 16), dtype=jnp.float32)
    out1 = jax.block_until_ready(gelu_tanh(x1, min_pallas_elems=0))
    ref1 = jax.nn.gelu(x1, approximate=True)
    assert out1.shape == x1.shape and out1.dtype == x1.dtype
    assert jnp.allclose(out1, ref1, atol=1e-5, rtol=1e-5)

    # Same input through the default dispatch (tiny -> fused XLA fallback).
    out1b = jax.block_until_ready(gelu_tanh(x1))
    assert jnp.allclose(out1b, ref1, atol=1e-5, rtol=1e-5)

    # 2) Larger f32, 128-aligned last dim (default dispatch -> Pallas, 2-step grid).
    x2 = jax.random.normal(k2, (4, 256, 1024), dtype=jnp.float32)
    out2 = jax.block_until_ready(gelu_tanh(x2))
    ref2 = jax.nn.gelu(x2, approximate=True)
    assert jnp.allclose(out2, ref2, atol=1e-5, rtol=1e-5)

    # 3) bf16, SigLIP-like hidden width (f32 compute in-kernel, bf16 in/out).
    x3 = jax.random.normal(k3, (8, 128, 1152), dtype=jnp.bfloat16)
    out3 = jax.block_until_ready(gelu_tanh(x3))
    ref3 = jax.nn.gelu(x3.astype(jnp.float32), approximate=True).astype(jnp.bfloat16)
    assert out3.dtype == jnp.bfloat16
    assert jnp.allclose(out3.astype(jnp.float32), ref3.astype(jnp.float32),
                        atol=2e-2, rtol=2e-2)

    # 4) Ragged, non-128-aligned last dim; force Pallas to exercise the full-last-dim
    #    block + masked partial last row-block path (no pad/copy anywhere).
    x4 = jax.random.normal(k4, (6, 100, 7), dtype=jnp.float32)
    out4 = jax.block_until_ready(gelu_tanh(x4, min_pallas_elems=0))
    ref4 = jax.nn.gelu(x4, approximate=True)
    assert out4.shape == x4.shape
    assert jnp.allclose(out4, ref4, atol=1e-5, rtol=1e-5)

    print("KERNEL_OK")
</pallas_src>

<mosaic_0001>
module attributes {stable_mosaic.version = 11 : i64} {
  func.func @_gelu_tanh_kernel(%arg0: i32, %arg1: memref<64x16xf32, #tpu.memory_space<vmem>>, %arg2: memref<64x16xf32, #tpu.memory_space<vmem>>) attributes {dimension_semantics = [#tpu.dimension_semantics<parallel>], iteration_bounds = array<i64: 2>, scalar_prefetch = 0 : i64, scratch_operands = 0 : i64, tpu.core_type = #tpu.core_type<tc>, window_params = [{transform_indices = @transform_0, window_bounds = array<i64: 64, 16>}, {transform_indices = @transform_1, window_bounds = array<i64: 64, 16>}]} {
    %c0 = arith.constant 0 : index
    %c0_0 = arith.constant 0 : index
    %0 = vector.load %arg1[%c0, %c0_0] : memref<64x16xf32, #tpu.memory_space<vmem>>, vector<64x16xf32>
    %1 = arith.mulf %0, %0 : vector<64x16xf32>
    %cst = arith.constant 0.0356774069 : f32
    %2 = vector.broadcast %cst : f32 to vector<64x16xf32>
    %3 = arith.mulf %2, %1 : vector<64x16xf32>
    %cst_1 = arith.constant 0.797884583 : f32
    %4 = vector.broadcast %cst_1 : f32 to vector<64x16xf32>
    %5 = arith.addf %4, %3 : vector<64x16xf32>
    %6 = arith.mulf %0, %5 : vector<64x16xf32>
    %7 = math.tanh %6 : vector<64x16xf32>
    %cst_2 = arith.constant 5.000000e-01 : f32
    %8 = vector.broadcast %cst_2 : f32 to vector<64x16xf32>
    %9 = arith.mulf %8, %0 : vector<64x16xf32>
    %10 = arith.mulf %9, %7 : vector<64x16xf32>
    %11 = arith.addf %9, %10 : vector<64x16xf32>
    %c0_3 = arith.constant 0 : index
    %c0_4 = arith.constant 0 : index
    %12 = vector.load %arg2[%c0_3, %c0_4] : memref<64x16xf32, #tpu.memory_space<vmem>>, vector<64x16xf32>
    tpu.vector_store %arg2[%c0_3, %c0_4], %11 {strides = array<i32>} : memref<64x16xf32, #tpu.memory_space<vmem>>, vector<64x16xf32>,
    return
  }
  func.func @transform_0(%arg0: i32) -> (i32, i32) {
    %c0_i32 = arith.constant 0 : i32
    %c0_i32_0 = arith.constant 0 : i32
    return %arg0, %c0_i32 : i32, i32
  }
  func.func @transform_1(%arg0: i32) -> (i32, i32) {
    %c0_i32 = arith.constant 0 : i32
    %c0_i32_0 = arith.constant 0 : i32
    return %arg0, %c0_i32 : i32, i32
  }
}

</mosaic_0001>

<bundles_post_ra>
// kernel: tpu_custom_call.1
= control target key start
LH: loop header
LB: loop body
LE: loop exit
PB: predicated region body
PF: predicated region fallthrough
CT: control target
= control target key end

     0   :  { %s310_s6 = smov 0   ;;  %s352_s0 = inlined_call_operand.vmem [shape: f32[128,16], index: 0, kind: input, shape index: {}]   ;;  %s353_s1 = inlined_call_operand.vmem [shape: f32[128,16], index: 1, kind: output, shape index: {}]  }
   0x1 LB: > { %s257_s7 = sadd.s32 4294967295, %s298_s6   ;;  %p261_p0 = scmp.ge.s32.totalorder %s298_s6, 1  ;;  %s298_s6 = sphi %s310_s6, %s11_s6  }
   0x2   : > { %p88_p1 = scmp.lt.s32.totalorder %s298_s6, 3 }
   0x4   : > { %p89_p2 = pnand %p261_p0, %p88_p1 }
   0x5   : > { %s262_s8 = sshll.u32 (!%p89_p2), %s257_s7, 3 }
   0x6   : > { %92 = sbr.rel (%p89_p2) target bundleno = 49 (0x31), region = 24  ;;  %p109_p3 = scmp.lt.s32.totalorder (!%p89_p2), %s262_s8, 15 }
   0xb   : > { %s355_s8 = smov (!%p109_p3, %s262_s8), 15  ;;  %vm192_vm0 = vcmask 130048  }
   0xc   : > { %s263_s9 = sshll.u32 %s355_s8, 3 }
   0xd   : > { %s112_s12 = scalar_lea.vmem %s352_s0, %s263_s9  ;;  %s331_s15 = scalar_lea.vmem %s353_s1, %s263_s9 }
   0xe   : > { %v120_v0 = vld [vmem:[%s112_s12] sm:$0xff]  ;;  %v121_v1 = vld [vmem:[%s112_s12 + $0x8] sm:$0xff]  ;;  %v122_v2 = vld [vmem:[%s112_s12 + $0x10] sm:$0xff] }
   0xf   : > { %v128_v3 = vmul.f32 %v120_v0, %v120_v0  ;;  %v129_v4 = vmul.f32 %v121_v1, %v121_v1  ;;  %v123_v5 = vld [vmem:[%s112_s12 + $0x18] sm:$0xff]  ;;  %v124_v6 = vld [vmem:[%s112_s12 + $0x20] sm:$0xff]  ;;  %v125_v7 = vld [vmem:[%s112_s12 + $0x28] sm:$0xff]  ;;  %v130_v8 = vmul.f32 %v122_v2, %v122_v2  ;;  %v168_v40 = vmul.f32 0.5, %v120_v0 }
  0x10   : > { %v131_v9 = vmul.f32 %v123_v5, %v123_v5  ;;  %v126_v10 = vld [vmem:[%s112_s12 + $0x30] sm:$0xff]  ;;  %v132_v13 = vmul.f32 %v124_v6, %v124_v6  ;;  %v127_v14 = vld [vmem:[%s112_s12 + $0x38] sm:$0xff]  ;;  %v133_v17 = vmul.f32 %v125_v7, %v125_v7  ;;  %v169_v41 = vmul.f32 0.5, %v121_v1 }
  0x11   : > { %v136_v11 = vmul.f32 0.035677407, %v128_v3  ;;  %v137_v12 = vmul.f32 0.035677407, %v129_v4  ;;  %v138_v15 = vmul.f32 0.035677407, %v130_v8  ;;  %v134_v21 = vmul.f32 %v126_v10, %v126_v10 }
  0x12   : > { %v139_v16 = vmul.f32 0.035677407, %v131_v9  ;;  %v140_v20 = vmul.f32 0.035677407, %v132_v13  ;;  %v141_v24 = vmul.f32 0.035677407, %v133_v17  ;;  %v135_v25 = vmul.f32 %v127_v14, %v127_v14 }
  0x13   : > { %v144_v18 = vadd.f32 0.7978846, %v136_v11  ;;  %v145_v19 = vadd.f32 0.7978846, %v137_v12  ;;  %v146_v22 = vadd.f32 0.7978846, %v138_v15 }
  0x14   : > { %v147_v23 = vadd.f32 0.7978846, %v139_v16  ;;  %v148_v28 = vadd.f32 0.7978846, %v140_v20  ;;  %v142_v29 = vmul.f32 0.035677407, %v134_v21 }
  0x15   : > { %v152_v26 = vmul.f32 %v144_v18, %v120_v0  ;;  %v153_v27 = vmul.f32 %v145_v19, %v121_v1  ;;  %v154_v30 = vmul.f32 %v146_v22, %v122_v2  ;;  %v149_v32 = vadd.f32 0.7978846, %v141_v24 }
  0x16   : > { %v155_v31 = vmul.f32 %v147_v23, %v123_v5  ;;  %v156_v33 = vmul.f32 %v148_v28, %v124_v6  ;;  %v150_v34 = vadd.f32 0.7978846, %v142_v29  ;;  %v143_v35 = vmul.f32 0.035677407, %v135_v25 }
  0x17   : > { %276 = vtanh.f32 %v152_v26  ;;  %v157_v36 = vmul.f32 %v149_v32, %v125_v7  ;;  %v170_v42 = vmul.f32 0.5, %v122_v2  ;;  %v171_v44 = vmul.f32 0.5, %v123_v5 }
  0x18   : > { %278 = vtanh.f32 %v153_v27  ;;  %v158_v37 = vmul.f32 %v150_v34, %v126_v10  ;;  %v151_v38 = vadd.f32 0.7978846, %v143_v35  ;;  %v172_v47 = vmul.f32 0.5, %v124_v6 }
  0x19   : > { %280 = vtanh.f32 %v154_v30  ;;  %v173_v50 = vmul.f32 0.5, %v125_v7  ;;  %v174_v54 = vmul.f32 0.5, %v126_v10  ;;  %v175_v58 = vmul.f32 0.5, %v127_v14 }
  0x1a   : > { %282 = vtanh.f32 %v155_v31  ;;  %v159_v39 = vmul.f32 %v151_v38, %v127_v14 }
  0x1b   : > { %284 = vtanh.f32 %v156_v33 }
  0x1c   : > { %286 = vtanh.f32 %v157_v36 }
  0x1d   : > { %288 = vtanh.f32 %v158_v37 }
  0x1e   : > { %290 = vtanh.f32 %v159_v39 }
  0x24   : > { %v277_v43 = vpop.eup %276 }
  0x25   : > { %v279_v45 = vpop.eup %278  ;;  %v176_v46 = vmul.f32 %v277_v43, %v168_v40 }
  0x26   : > { %v281_v48 = vpop.eup %280  ;;  %v177_v49 = vmul.f32 %v279_v45, %v169_v41 }
  0x27   : > { %v283_v51 = vpop.eup %282  ;;  %v184_v52 = vadd.f32 %v176_v46, %v168_v40  ;;  %v178_v53 = vmul.f32 %v281_v48, %v170_v42 }
  0x28   : > { %v285_v55 = vpop.eup %284  ;;  %v185_v56 = vadd.f32 %v177_v49, %v169_v41  ;;  %v179_v57 = vmul.f32 %v283_v51, %v171_v44 }
  0x29   : > { %v287_v59 = vpop.eup %286  ;;  %193 = vst.msk [vmem:[%s331_s15] sm:$0xff] %vm192_vm0, %v184_v52  ;;  %v186_v60 = vadd.f32 %v178_v53, %v170_v42  ;;  %v180_v61 = vmul.f32 %v285_v55, %v172_v47 }
  0x2a   : > { %v289_v62 = vpop.eup %288  ;;  %194 = vst.msk [vmem:[%s331_s15 + $0x8] sm:$0xff] %vm192_vm0, %v185_v56  ;;  %v187_v63 = vadd.f32 %v179_v57, %v171_v44  ;;  %v181_v0 = vmul.f32 %v287_v59, %v173_v50 }
  0x2b   : > { %v291_v1 = vpop.eup %290  ;;  %195 = vst.msk [vmem:[%s331_s15 + $0x10] sm:$0xff] %vm192_vm0, %v186_v60  ;;  %v188_v2 = vadd.f32 %v180_v61, %v172_v47  ;;  %v182_v3 = vmul.f32 %v289_v62, %v174_v54 }
  0x2c   : > { %196 = vst.msk [vmem:[%s331_s15 + $0x18] sm:$0xff] %vm192_vm0, %v187_v63  ;;  %v189_v4 = vadd.f32 %v181_v0, %v173_v50  ;;  %v183_v5 = vmul.f32 %v291_v1, %v175_v58 }
  0x2d   : > { %197 = vst.msk [vmem:[%s331_s15 + $0x20] sm:$0xff] %vm192_vm0, %v188_v2  ;;  %v190_v6 = vadd.f32 %v182_v3, %v174_v54 }
  0x2e   : > { %198 = vst.msk [vmem:[%s331_s15 + $0x28] sm:$0xff] %vm192_vm0, %v189_v4  ;;  %v191_v7 = vadd.f32 %v183_v5, %v175_v58 }
  0x2f   : > { %199 = vst.msk [vmem:[%s331_s15 + $0x30] sm:$0xff] %vm192_vm0, %v190_v6 }
  0x30   : > { %200 = vst.msk [vmem:[%s331_s15 + $0x38] sm:$0xff] %vm192_vm0, %v191_v7 }
  0x31 PF: > { %s11_s6 = sadd.s32 1, %s298_s6  }
  0x32   : > { %p8_p4 = scmp.ge.s32.totalorder %s11_s6, 4  }
  0x34   :  { %10 = sbr.rel (!%p8_p4) target bundleno = 1 (0x1), region = 54 }

</bundles_post_ra>
